<compile_context>
chip_gen: v7x
topology: tpu7x:2x2x1
jax: 0.10.0
libtpu: 0.0.40
codegen_flags: <defaults>
</compile_context>

<pallas_src>
import functools

import jax
import jax.numpy as jnp
from jax.experimental import pallas as pl
from jax.experimental.pallas import tpu as pltpu


def _gnn3d_kernel(x0_ref, adj_ref, sscale_ref, w1_ref, b1_ref, w2_ref, b2_ref,
                  gamma_ref, beta_ref, out_ref, *, k, d):
    l = pl.program_id(0)
    n, kd = out_ref.shape
    nk = float(n * k)

    # Layer 0: seed the resident activation state with the (padded) input.
    @pl.when(l == 0)
    def _():
        out_ref[...] = x0_ref[...]

    x = out_ref[...]                                        # (n, k*d) f32

    # --- GIN aggregation: one lane-dense MXU matmul (n,n) @ (n, k*d) ---
    neigh = jnp.dot(adj_ref[...], x.astype(jnp.bfloat16),
                    preferred_element_type=jnp.float32)
    agg = neigh + sscale_ref[...] * x                       # sscale = 1 + eps

    # --- per-channel 2-layer MLP via block-diagonal kron(I_k, W) weights ---
    h = jnp.dot(agg.astype(jnp.bfloat16), w1_ref[...],
                preferred_element_type=jnp.float32) + b1_ref[...]
    h = jnp.maximum(h, 0.0)
    h = jnp.dot(h.astype(jnp.bfloat16), w2_ref[...],
                preferred_element_type=jnp.float32) + b2_ref[...]

    # --- MaskedBN (mask=None): batch stats per feature over all n*k rows,
    #     folded into one scale/shift.  The reduction across the k channel
    #     chunks is a tiny (1,kd)x(kd,kd) matmul against a 0/1 replicator so
    #     every tensor stays lane-dense (no reshapes / narrow-lane slices).
    col_sum = jnp.sum(h, axis=0, keepdims=True)             # (1, k*d)
    col_sumsq = jnp.sum(h * h, axis=0, keepdims=True)       # (1, k*d)
    ri = jax.lax.broadcasted_iota(jnp.int32, (kd, kd), 0) % d
    rj = jax.lax.broadcasted_iota(jnp.int32, (kd, kd), 1) % d
    rep = (ri == rj).astype(jnp.float32)                    # (k*d, k*d)
    mean = jnp.dot(col_sum, rep, preferred_element_type=jnp.float32) / nk
    ex2 = jnp.dot(col_sumsq, rep, preferred_element_type=jnp.float32) / nk
    var = jnp.maximum(ex2 - mean * mean, 0.0)
    scale = gamma_ref[...] * jax.lax.rsqrt(var + 1e-5)      # (1, k*d)
    shift = beta_ref[...] - mean * scale                    # (1, k*d)
    h = jnp.maximum(h * scale + shift, 0.0)

    # --- residual: previous_x is this layer's input (zero for layer 0) ---
    @pl.when(l == 0)
    def _():
        out_ref[...] = h

    @pl.when(l > 0)
    def _():
        out_ref[...] = h + x


def _gnn3d_fused(x0, adj, packed, *, n, k, d):
    kd = k * d
    num_layers = packed["w1"].shape[0]
    kernel = functools.partial(_gnn3d_kernel, k=k, d=d)
    grid_spec = pltpu.PrefetchScalarGridSpec(
        num_scalar_prefetch=0,
        grid=(num_layers,),
        in_specs=[
            pl.BlockSpec((n, kd), lambda l: (0, 0)),            # x0 (resident)
            pl.BlockSpec((n, n), lambda l: (0, 0)),             # adj (resident)
            pl.BlockSpec((None, 1, kd), lambda l: (l, 0, 0)),   # 1 + eps
            pl.BlockSpec((None, kd, kd), lambda l: (l, 0, 0)),  # W1 block-diag
            pl.BlockSpec((None, 1, kd), lambda l: (l, 0, 0)),   # b1
            pl.BlockSpec((None, kd, kd), lambda l: (l, 0, 0)),  # W2 block-diag
            pl.BlockSpec((None, 1, kd), lambda l: (l, 0, 0)),   # b2
            pl.BlockSpec((None, 1, kd), lambda l: (l, 0, 0)),   # gamma
            pl.BlockSpec((None, 1, kd), lambda l: (l, 0, 0)),   # beta
        ],
        out_specs=pl.BlockSpec((n, kd), lambda l: (0, 0)),      # carried state
    )
    return pl.pallas_call(
        kernel,
        out_shape=jax.ShapeDtypeStruct((n, kd), jnp.float32),
        grid_spec=grid_spec,
        compiler_params=pltpu.CompilerParams(
            dimension_semantics=("arbitrary",)),
    )(x0, adj, packed["sscale"], packed["w1"], packed["b1"],
      packed["w2"], packed["b2"], packed["gamma"], packed["beta"])


def pack_params(params, k, n_out):
    """Stack per-layer params as (L, ...) arrays in the lane-dense layout."""
    eye_k = jnp.eye(k, dtype=jnp.float32)
    kd = k * n_out
    w1s, b1s, w2s, b2s, gs, bs, ss = [], [], [], [], [], [], []
    for p in params:
        w1 = p["w1"]                                   # (d_in, nhid)
        d_in = w1.shape[0]
        if d_in < n_out:                               # layer-0 feature pad
            w1 = jnp.pad(w1, ((0, n_out - d_in), (0, 0)))
        w1s.append(jnp.kron(eye_k, w1))                # (k*n_out, k*nhid)
        w2s.append(jnp.kron(eye_k, p["w2"]))           # (k*nhid, k*n_out)
        b1s.append(jnp.tile(p["b1"], (1, k)))          # (1, k*nhid)
        b2s.append(jnp.tile(p["b2"], (1, k)))          # (1, k*n_out)
        gs.append(jnp.tile(p["gamma"], (1, k)))
        bs.append(jnp.tile(p["beta"], (1, k)))
        ss.append(jnp.full((1, kd), 1.0 + p["eps"][0], jnp.float32))
    return dict(
        w1=jnp.stack(w1s).astype(jnp.bfloat16),
        b1=jnp.stack(b1s).astype(jnp.float32),
        w2=jnp.stack(w2s).astype(jnp.bfloat16),
        b2=jnp.stack(b2s).astype(jnp.float32),
        gamma=jnp.stack(gs).astype(jnp.float32),
        beta=jnp.stack(bs).astype(jnp.float32),
        sscale=jnp.stack(ss).astype(jnp.float32),
    )


def gnn3d_forward(x_nkd, adj, params, n_out):
    """x_nkd: (n, k, d_in), adj: dense (n, n).  Returns (n, k, n_out)."""
    n, k, n_in = x_nkd.shape
    assert n_in <= n_out, "layer-0 features are zero-padded up to n_out"
    packed = pack_params(params, k, n_out)
    x0 = jnp.pad(x_nkd, ((0, 0), (0, 0), (0, n_out - n_in)))
    x0 = x0.reshape(n, k * n_out).astype(jnp.float32)       # lane-dense slab
    out_flat = _gnn3d_fused(x0, adj.astype(jnp.bfloat16), packed,
                            n=n, k=k, d=n_out)
    return out_flat.reshape(n, k, n_out)


def init_params(key, n_in, n_out, n_layer):
    params = []
    for i in range(n_layer):
        d_in = n_in if i == 0 else n_out
        nhid = n_out
        key, k1, k2 = jax.random.split(key, 3)
        params.append(dict(
            w1=(jax.random.normal(k1, (d_in, nhid), jnp.float32)
                * (1.0 / jnp.sqrt(d_in))),
            b1=jnp.zeros((1, nhid), jnp.float32),
            w2=(jax.random.normal(k2, (nhid, n_out), jnp.float32)
                * (1.0 / jnp.sqrt(nhid))),
            b2=jnp.zeros((1, n_out), jnp.float32),
            gamma=jnp.ones((1, n_out), jnp.float32),
            beta=jnp.zeros((1, n_out), jnp.float32),
            eps=jnp.zeros((1,), jnp.float32),          # GIN train_eps init
        ))
    return params


def edge_index_to_dense_adj(edge_index, n):
    # PyG convention: edge_index[0] = src, edge_index[1] = dst; messages flow
    # src -> dst, so adj[dst, src] = 1 and aggregation is adj @ x.
    src, dst = edge_index
    adj = jnp.zeros((n, n), jnp.float32)
    return adj.at[dst, src].set(1.0)


if __name__ == "__main__":
    # Small shapes: n nodes, k eigvec channels, d_in features, n_out hidden.
    n, k, n_in, n_out, n_layer = 16, 4, 8, 32, 3

    key = jax.random.PRNGKey(0)
    key, kx = jax.random.split(key)
    x = jax.random.normal(kx, (n, k, n_in), jnp.float32)

    # Deterministic graph: bidirectional ring on n nodes.
    src = jnp.arange(n, dtype=jnp.int32)
    dst = (src + 1) % n
    edge_index = jnp.stack(
        [jnp.concatenate([src, dst]), jnp.concatenate([dst, src])], axis=0)
    adj = edge_index_to_dense_adj(edge_index, n)

    params = init_params(key, n_in, n_out, n_layer)

    out = gnn3d_forward(x, adj, params, n_out)
    out = jax.block_until_ready(out)
    assert out.shape == (n, k, n_out)
    assert bool(jnp.all(jnp.isfinite(out)))
    print("KERNEL_OK")
</pallas_src>

<mosaic_0001>
module attributes {stable_mosaic.version = 11 : i64} {
  func.func @_gnn3d_kernel(%arg0: i32, %arg1: memref<16x128xf32, #tpu.memory_space<vmem>>, %arg2: memref<16x16xbf16, #tpu.memory_space<vmem>>, %arg3: memref<1x1x128xf32, #tpu.memory_space<vmem>>, %arg4: memref<1x128x128xbf16, #tpu.memory_space<vmem>>, %arg5: memref<1x1x128xf32, #tpu.memory_space<vmem>>, %arg6: memref<1x128x128xbf16, #tpu.memory_space<vmem>>, %arg7: memref<1x1x128xf32, #tpu.memory_space<vmem>>, %arg8: memref<1x1x128xf32, #tpu.memory_space<vmem>>, %arg9: memref<1x1x128xf32, #tpu.memory_space<vmem>>, %arg10: memref<16x128xf32, #tpu.memory_space<vmem>>) attributes {dimension_semantics = [#tpu.dimension_semantics<arbitrary>], iteration_bounds = array<i64: 3>, scalar_prefetch = 0 : i64, scratch_operands = 0 : i64, tpu.core_type = #tpu.core_type<tc>, window_params = [{pipeline_mode = #tpu.pipeline_mode<synchronous>, transform_indices = @transform_0, window_bounds = array<i64: 16, 128>}, {pipeline_mode = #tpu.pipeline_mode<synchronous>, transform_indices = @transform_1, window_bounds = array<i64: 16, 16>}, {transform_indices = @transform_2, window_bounds = array<i64: 1, 1, 128>}, {transform_indices = @transform_3, window_bounds = array<i64: 1, 128, 128>}, {transform_indices = @transform_4, window_bounds = array<i64: 1, 1, 128>}, {transform_indices = @transform_5, window_bounds = array<i64: 1, 128, 128>}, {transform_indices = @transform_6, window_bounds = array<i64: 1, 1, 128>}, {transform_indices = @transform_7, window_bounds = array<i64: 1, 1, 128>}, {transform_indices = @transform_8, window_bounds = array<i64: 1, 1, 128>}, {pipeline_mode = #tpu.pipeline_mode<synchronous>, transform_indices = @transform_9, window_bounds = array<i64: 16, 128>}]} {
    %c0_i32 = arith.constant 0 : i32
    %0 = arith.cmpi eq, %arg0, %c0_i32 : i32
    %1 = arith.extui %0 : i1 to i32
    %c0_i32_0 = arith.constant 0 : i32
    %2 = arith.cmpi ne, %1, %c0_i32_0 : i32
    scf.if %2 {
      %c0_51 = arith.constant 0 : index
      %c0_52 = arith.constant 0 : index
      %104 = vector.load %arg1[%c0_51, %c0_52] : memref<16x128xf32, #tpu.memory_space<vmem>>, vector<16x128xf32>
      %c0_53 = arith.constant 0 : index
      %c0_54 = arith.constant 0 : index
      %105 = vector.load %arg10[%c0_53, %c0_54] : memref<16x128xf32, #tpu.memory_space<vmem>>, vector<16x128xf32>
      tpu.vector_store %arg10[%c0_53, %c0_54], %104 {strides = array<i32>} : memref<16x128xf32, #tpu.memory_space<vmem>>, vector<16x128xf32>,
    } else {
    }
    %c0 = arith.constant 0 : index
    %c0_1 = arith.constant 0 : index
    %3 = vector.load %arg10[%c0, %c0_1] : memref<16x128xf32, #tpu.memory_space<vmem>>, vector<16x128xf32>
    %c0_2 = arith.constant 0 : index
    %c0_3 = arith.constant 0 : index
    %4 = vector.load %arg2[%c0_2, %c0_3] : memref<16x16xbf16, #tpu.memory_space<vmem>>, vector<16x16xbf16>
    %5 = arith.truncf %3 : vector<16x128xf32> to vector<16x128xbf16>
    %cst = arith.constant dense<0.000000e+00> : vector<16x128xf32>
    %6 = tpu.matmul %4, %5, %cst {dimension_numbers = #tpu.dot_dimension_numbers<[1], [0], [0], [1], [0, 0, 1, 1], [], []>} : vector<16x16xbf16>, vector<16x128xbf16>, vector<16x128xf32> -> vector<16x128xf32>
    %c0_4 = arith.constant 0 : index
    %c0_5 = arith.constant 0 : index
    %c0_6 = arith.constant 0 : index
    %7 = vector.load %arg3[%c0_4, %c0_5, %c0_6] : memref<1x1x128xf32, #tpu.memory_space<vmem>>, vector<1x1x128xf32>
    %8 = vector.shape_cast %7 : vector<1x1x128xf32> to vector<1x128xf32>
    %9 = vector.broadcast %8 : vector<1x128xf32> to vector<16x128xf32>
    %10 = arith.mulf %9, %3 : vector<16x128xf32>
    %11 = arith.addf %6, %10 : vector<16x128xf32>
    %12 = arith.truncf %11 : vector<16x128xf32> to vector<16x128xbf16>
    %c0_7 = arith.constant 0 : index
    %c0_8 = arith.constant 0 : index
    %c0_9 = arith.constant 0 : index
    %13 = vector.load %arg4[%c0_7, %c0_8, %c0_9] : memref<1x128x128xbf16, #tpu.memory_space<vmem>>, vector<1x128x128xbf16>
    %14 = vector.shape_cast %13 : vector<1x128x128xbf16> to vector<128x128xbf16>
    %cst_10 = arith.constant dense<0.000000e+00> : vector<16x128xf32>
    %15 = tpu.matmul %12, %14, %cst_10 {dimension_numbers = #tpu.dot_dimension_numbers<[1], [0], [0], [1], [0, 0, 1, 1], [], []>} : vector<16x128xbf16>, vector<128x128xbf16>, vector<16x128xf32> -> vector<16x128xf32>
    %c0_11 = arith.constant 0 : index
    %c0_12 = arith.constant 0 : index
    %c0_13 = arith.constant 0 : index
    %16 = vector.load %arg5[%c0_11, %c0_12, %c0_13] : memref<1x1x128xf32, #tpu.memory_space<vmem>>, vector<1x1x128xf32>
    %17 = vector.shape_cast %16 : vector<1x1x128xf32> to vector<1x128xf32>
    %18 = vector.broadcast %17 : vector<1x128xf32> to vector<16x128xf32>
    %19 = arith.addf %15, %18 : vector<16x128xf32>
    %cst_14 = arith.constant 0.000000e+00 : f32
    %20 = vector.broadcast %cst_14 : f32 to vector<16x128xf32>
    %21 = arith.maximumf %19, %20 : vector<16x128xf32>
    %22 = arith.truncf %21 : vector<16x128xf32> to vector<16x128xbf16>
    %c0_15 = arith.constant 0 : index
    %c0_16 = arith.constant 0 : index
    %c0_17 = arith.constant 0 : index
    %23 = vector.load %arg6[%c0_15, %c0_16, %c0_17] : memref<1x128x128xbf16, #tpu.memory_space<vmem>>, vector<1x128x128xbf16>
    %24 = vector.shape_cast %23 : vector<1x128x128xbf16> to vector<128x128xbf16>
    %cst_18 = arith.constant dense<0.000000e+00> : vector<16x128xf32>
    %25 = tpu.matmul %22, %24, %cst_18 {dimension_numbers = #tpu.dot_dimension_numbers<[1], [0], [0], [1], [0, 0, 1, 1], [], []>} : vector<16x128xbf16>, vector<128x128xbf16>, vector<16x128xf32> -> vector<16x128xf32>
    %c0_19 = arith.constant 0 : index
    %c0_20 = arith.constant 0 : index
    %c0_21 = arith.constant 0 : index
    %26 = vector.load %arg7[%c0_19, %c0_20, %c0_21] : memref<1x1x128xf32, #tpu.memory_space<vmem>>, vector<1x1x128xf32>
    %27 = vector.shape_cast %26 : vector<1x1x128xf32> to vector<1x128xf32>
    %28 = vector.broadcast %27 : vector<1x128xf32> to vector<16x128xf32>
    %29 = arith.addf %25, %28 : vector<16x128xf32>
    %cst_22 = arith.constant dense<0.000000e+00> : vector<128xf32>
    %30 = vector.multi_reduction <add>, %29, %cst_22 [0] : vector<16x128xf32> to vector<128xf32>
    %31 = vector.shape_cast %30 : vector<128xf32> to vector<1x128xf32>
    %32 = arith.mulf %29, %29 : vector<16x128xf32>
    %cst_23 = arith.constant dense<0.000000e+00> : vector<128xf32>
    %33 = vector.multi_reduction <add>, %32, %cst_23 [0] : vector<16x128xf32> to vector<128xf32>
    %34 = vector.shape_cast %33 : vector<128xf32> to vector<1x128xf32>
    %35 = tpu.iota {dimensions = array<i32: 0>} : vector<128x128xi32>
    %c32_i32 = arith.constant 32 : i32
    %c0_i32_24 = arith.constant 0 : i32
    %36 = arith.cmpi eq, %c32_i32, %c0_i32_24 : i32
    %c1_i32 = arith.constant 1 : i32
    %37 = arith.select %36, %c1_i32, %c32_i32 : i32
    %38 = vector.broadcast %37 : i32 to vector<128x128xi32>
    %39 = arith.remsi %35, %38 : vector<128x128xi32>
    %c0_i32_25 = arith.constant 0 : i32
    %40 = vector.broadcast %c0_i32_25 : i32 to vector<128x128xi32>
    %41 = arith.cmpi ne, %39, %40 : vector<128x128xi32>
    %c0_i32_26 = arith.constant 0 : i32
    %42 = vector.broadcast %c0_i32_26 : i32 to vector<128x128xi32>
    %43 = arith.cmpi slt, %39, %42 : vector<128x128xi32>
    %c0_i32_27 = arith.constant 0 : i32
    %44 = arith.cmpi slt, %37, %c0_i32_27 : i32
    %45 = vector.broadcast %44 : i1 to vector<128x128xi1>
    %46 = vector.broadcast %45 : vector<128x128xi1> to vector<128x128xi1>
    %47 = arith.xori %43, %46 : vector<128x128xi1>
    %48 = arith.andi %47, %41 : vector<128x128xi1>
    %49 = vector.broadcast %37 : i32 to vector<128x128xi32>
    %50 = arith.addi %39, %49 : vector<128x128xi32>
    %51 = arith.select %48, %50, %39 : vector<128x128xi1>, vector<128x128xi32>
    %52 = tpu.iota {dimensions = array<i32: 1>} : vector<128x128xi32>
    %c32_i32_28 = arith.constant 32 : i32
    %c0_i32_29 = arith.constant 0 : i32
    %53 = arith.cmpi eq, %c32_i32_28, %c0_i32_29 : i32
    %c1_i32_30 = arith.constant 1 : i32
    %54 = arith.select %53, %c1_i32_30, %c32_i32_28 : i32
    %55 = vector.broadcast %54 : i32 to vector<128x128xi32>
    %56 = arith.remsi %52, %55 : vector<128x128xi32>
    %c0_i32_31 = arith.constant 0 : i32
    %57 = vector.broadcast %c0_i32_31 : i32 to vector<128x128xi32>
    %58 = arith.cmpi ne, %56, %57 : vector<128x128xi32>
    %c0_i32_32 = arith.constant 0 : i32
    %59 = vector.broadcast %c0_i32_32 : i32 to vector<128x128xi32>
    %60 = arith.cmpi slt, %56, %59 : vector<128x128xi32>
    %c0_i32_33 = arith.constant 0 : i32
    %61 = arith.cmpi slt, %54, %c0_i32_33 : i32
    %62 = vector.broadcast %61 : i1 to vector<128x128xi1>
    %63 = vector.broadcast %62 : vector<128x128xi1> to vector<128x128xi1>
    %64 = arith.xori %60, %63 : vector<128x128xi1>
    %65 = arith.andi %64, %58 : vector<128x128xi1>
    %66 = vector.broadcast %54 : i32 to vector<128x128xi32>
    %67 = arith.addi %56, %66 : vector<128x128xi32>
    %68 = arith.select %65, %67, %56 : vector<128x128xi1>, vector<128x128xi32>
    %69 = arith.cmpi eq, %51, %68 : vector<128x128xi32>
    %70 = arith.extui %69 : vector<128x128xi1> to vector<128x128xi32>
    %71 = arith.sitofp %70 : vector<128x128xi32> to vector<128x128xf32>
    %cst_34 = arith.constant dense<0.000000e+00> : vector<1x128xf32>
    %72 = tpu.matmul %31, %71, %cst_34 {dimension_numbers = #tpu.dot_dimension_numbers<[1], [0], [0], [1], [0, 0, 1, 1], [], []>} : vector<1x128xf32>, vector<128x128xf32>, vector<1x128xf32> -> vector<1x128xf32>
    %cst_35 = arith.constant 6.400000e+01 : f32
    %73 = vector.broadcast %cst_35 : f32 to vector<1x128xf32>
    %74 = arith.divf %72, %73 : vector<1x128xf32>
    %cst_36 = arith.constant dense<0.000000e+00> : vector<1x128xf32>
    %75 = tpu.matmul %34, %71, %cst_36 {dimension_numbers = #tpu.dot_dimension_numbers<[1], [0], [0], [1], [0, 0, 1, 1], [], []>} : vector<1x128xf32>, vector<128x128xf32>, vector<1x128xf32> -> vector<1x128xf32>
    %cst_37 = arith.constant 6.400000e+01 : f32
    %76 = vector.broadcast %cst_37 : f32 to vector<1x128xf32>
    %77 = arith.divf %75, %76 : vector<1x128xf32>
    %78 = arith.mulf %74, %74 : vector<1x128xf32>
    %79 = arith.subf %77, %78 : vector<1x128xf32>
    %cst_38 = arith.constant 0.000000e+00 : f32
    %80 = vector.broadcast %cst_38 : f32 to vector<1x128xf32>
    %81 = arith.maximumf %79, %80 : vector<1x128xf32>
    %c0_39 = arith.constant 0 : index
    %c0_40 = arith.constant 0 : index
    %c0_41 = arith.constant 0 : index
    %82 = vector.load %arg8[%c0_39, %c0_40, %c0_41] : memref<1x1x128xf32, #tpu.memory_space<vmem>>, vector<1x1x128xf32>
    %83 = vector.shape_cast %82 : vector<1x1x128xf32> to vector<1x128xf32>
    %cst_42 = arith.constant 9.99999974E-6 : f32
    %84 = vector.broadcast %cst_42 : f32 to vector<1x128xf32>
    %85 = arith.addf %81, %84 : vector<1x128xf32>
    %86 = math.rsqrt %85 : vector<1x128xf32>
    %87 = arith.mulf %83, %86 : vector<1x128xf32>
    %c0_43 = arith.constant 0 : index
    %c0_44 = arith.constant 0 : index
    %c0_45 = arith.constant 0 : index
    %88 = vector.load %arg9[%c0_43, %c0_44, %c0_45] : memref<1x1x128xf32, #tpu.memory_space<vmem>>, vector<1x1x128xf32>
    %89 = vector.shape_cast %88 : vector<1x1x128xf32> to vector<1x128xf32>
    %90 = arith.mulf %74, %87 : vector<1x128xf32>
    %91 = arith.subf %89, %90 : vector<1x128xf32>
    %92 = vector.broadcast %87 : vector<1x128xf32> to vector<16x128xf32>
    %93 = arith.mulf %29, %92 : vector<16x128xf32>
    %94 = vector.broadcast %91 : vector<1x128xf32> to vector<16x128xf32>
    %95 = arith.addf %93, %94 : vector<16x128xf32>
    %cst_46 = arith.constant 0.000000e+00 : f32
    %96 = vector.broadcast %cst_46 : f32 to vector<16x128xf32>
    %97 = arith.maximumf %95, %96 : vector<16x128xf32>
    %c0_i32_47 = arith.constant 0 : i32
    %98 = arith.cmpi eq, %arg0, %c0_i32_47 : i32
    %99 = arith.extui %98 : i1 to i32
    %c0_i32_48 = arith.constant 0 : i32
    %100 = arith.cmpi ne, %99, %c0_i32_48 : i32
    scf.if %100 {
      %c0_51 = arith.constant 0 : index
      %c0_52 = arith.constant 0 : index
      %104 = vector.load %arg10[%c0_51, %c0_52] : memref<16x128xf32, #tpu.memory_space<vmem>>, vector<16x128xf32>
      tpu.vector_store %arg10[%c0_51, %c0_52], %97 {strides = array<i32>} : memref<16x128xf32, #tpu.memory_space<vmem>>, vector<16x128xf32>,
    } else {
    }
    %c0_i32_49 = arith.constant 0 : i32
    %101 = arith.cmpi sgt, %arg0, %c0_i32_49 : i32
    %102 = arith.extui %101 : i1 to i32
    %c0_i32_50 = arith.constant 0 : i32
    %103 = arith.cmpi ne, %102, %c0_i32_50 : i32
    scf.if %103 {
      %104 = arith.addf %97, %3 : vector<16x128xf32>
      %c0_51 = arith.constant 0 : index
      %c0_52 = arith.constant 0 : index
      %105 = vector.load %arg10[%c0_51, %c0_52] : memref<16x128xf32, #tpu.memory_space<vmem>>, vector<16x128xf32>
      tpu.vector_store %arg10[%c0_51, %c0_52], %104 {strides = array<i32>} : memref<16x128xf32, #tpu.memory_space<vmem>>, vector<16x128xf32>,
    } else {
    }
    return
  }
  func.func @transform_0(%arg0: i32) -> (i32, i32) {
    %c0_i32 = arith.constant 0 : i32
    %c0_i32_0 = arith.constant 0 : i32
    %c0_i32_1 = arith.constant 0 : i32
    return %c0_i32, %c0_i32_0 : i32, i32
  }
  func.func @transform_1(%arg0: i32) -> (i32, i32) {
    %c0_i32 = arith.constant 0 : i32
    %c0_i32_0 = arith.constant 0 : i32
    %c0_i32_1 = arith.constant 0 : i32
    return %c0_i32, %c0_i32_0 : i32, i32
  }
  func.func @transform_2(%arg0: i32) -> (i32, i32, i32) {
    %c0_i32 = arith.constant 0 : i32
    %c0_i32_0 = arith.constant 0 : i32
    %c0_i32_1 = arith.constant 0 : i32
    return %arg0, %c0_i32, %c0_i32_0 : i32, i32, i32
  }
  func.func @transform_3(%arg0: i32) -> (i32, i32, i32) {
    %c0_i32 = arith.constant 0 : i32
    %c0_i32_0 = arith.constant 0 : i32
    %c0_i32_1 = arith.constant 0 : i32
    return %arg0, %c0_i32, %c0_i32_0 : i32, i32, i32
  }
  func.func @transform_4(%arg0: i32) -> (i32, i32, i32) {
    %c0_i32 = arith.constant 0 : i32
    %c0_i32_0 = arith.constant 0 : i32
    %c0_i32_1 = arith.constant 0 : i32
    return %arg0, %c0_i32, %c0_i32_0 : i32, i32, i32
  }
  func.func @transform_5(%arg0: i32) -> (i32, i32, i32) {
    %c0_i32 = arith.constant 0 : i32
    %c0_i32_0 = arith.constant 0 : i32
    %c0_i32_1 = arith.constant 0 : i32
    return %arg0, %c0_i32, %c0_i32_0 : i32, i32, i32
  }
  func.func @transform_6(%arg0: i32) -> (i32, i32, i32) {
    %c0_i32 = arith.constant 0 : i32
    %c0_i32_0 = arith.constant 0 : i32
    %c0_i32_1 = arith.constant 0 : i32
    return %arg0, %c0_i32, %c0_i32_0 : i32, i32, i32
  }
  func.func @transform_7(%arg0: i32) -> (i32, i32, i32) {
    %c0_i32 = arith.constant 0 : i32
    %c0_i32_0 = arith.constant 0 : i32
    %c0_i32_1 = arith.constant 0 : i32
    return %arg0, %c0_i32, %c0_i32_0 : i32, i32, i32
  }
  func.func @transform_8(%arg0: i32) -> (i32, i32, i32) {
    %c0_i32 = arith.constant 0 : i32
    %c0_i32_0 = arith.constant 0 : i32
    %c0_i32_1 = arith.constant 0 : i32
    return %arg0, %c0_i32, %c0_i32_0 : i32, i32, i32
  }
  func.func @transform_9(%arg0: i32) -> (i32, i32) {
    %c0_i32 = arith.constant 0 : i32
    %c0_i32_0 = arith.constant 0 : i32
    %c0_i32_1 = arith.constant 0 : i32
    return %c0_i32, %c0_i32_0 : i32, i32
  }
}

</mosaic_0001>

<bundles_post_ra>
// kernel: tpu_custom_call.1
= control target key start
LH: loop header
LB: loop body
LE: loop exit
PB: predicated region body
PF: predicated region fallthrough
CT: control target
= control target key end

     0   :  { %s2552_s0 = inlined_call_operand.hbm [shape: f32[16,128], index: 0, kind: input, shape index: {}]   ;;  %s2553_s1 = inlined_call_operand.hbm [shape: bf16[16,16], index: 1, kind: input, shape index: {}]   ;;  %s2554_s2 = inlined_call_operand.vmem [shape: f32[3,1,128], index: 2, kind: input, shape index: {}]   ;;  %s2555_s3 = inlined_call_operand.hbm [shape: bf16[3,128,128], index: 3, kind: input, shape index: {}]   ;;  %s2556_s4 = inlined_call_operand.vmem [shape: f32[3,1,128], index: 4, kind: input, shape index: {}]   ;;  %s2557_s5 = inlined_call_operand.hbm [shape: bf16[3,128,128], index: 5, kind: input, shape index: {}]   ;;  %s2558_s6 = inlined_call_operand.vmem [shape: f32[3,1,128], index: 6, kind: input, shape index: {}]   ;;  %s2559_s7 = inlined_call_operand.vmem [shape: f32[3,1,128], index: 7, kind: input, shape index: {}]   ;;  %s2560_s8 = inlined_call_operand.vmem [shape: f32[3,1,128], index: 8, kind: input, shape index: {}]   ;;  %s2561_s9 = inlined_call_operand.hbm [shape: f32[16,128], index: 9, kind: output, shape index: {}]  }
   0x1   :  { %2572 = sst [smem:[#allocation16_spill]] %s2552_s0 }
   0x2   :  { %14 = vsyncpa [#allocation3], 0 }
   0x3   :  { %15 = vsyncpa [#allocation6], 0 }
   0x4   :  { %16 = vsyncpa [#allocation4], 0  ;;  %s2056_s30 = smov 0   ;;  %s2058_s10 = smov 0  }
   0x5   :  { %s2060_s11 = smov 0   ;;  %s2062_s12 = smov 0  }
   0x6 LB: > { %s2075_s13 = sadd.s32 4294967295, %s1989_s12   ;;  %s2078_s14 = sadd.s32 1, %s1989_s12   ;;  %s1989_s12 = sphi %s2062_s12, %s2608_s12   ;;  %s1985_s11 = sphi %s2060_s11, %s2612_s11   ;;  %s1981_s10 = sphi %s2058_s10, %s2611_s10   ;;  %s1977_s30 = sphi %s2056_s30, %s2610_s30  }
   0x7   : > { %2573 = sst [smem:[#allocation14_spill]] %s2078_s14  ;;  %s94_s15 = ssub.s32 %s1989_s12, %s2078_s14 }
   0x8   : > { %s97_s16 = sadd.s32 1, %s1985_s11  ;;  %p95_p0 = scmp.eq.s32.totalorder %s94_s15, 0 }
   0x9   : > { %p104_p1 = scmp.ne.s32.totalorder %s1985_s11, %s1981_s10  ;;  %p105_p2 = scmp.eq.s32.totalorder %s1989_s12, 0 }
   0xa   : > { %p110_p3 = scmp.ne.s32.totalorder %s1981_s10, %s1977_s30  ;;  %p2562_p5 = scmp.eq.s32.totalorder %s2075_s13, 0 }
   0xb   : > { %s2088_s17 = scalar_select %p95_p0, %s1985_s11, %s97_s16  }
   0xc   : > { %p2090_p4 = por %p105_p2, %p104_p1  ;;  %p1389_p6 = scmp.ge.s32.totalorder %s1989_s12, 1 }
   0xd   : > { %2574 = sst [smem:[#allocation15_spill]] %s2088_s17  ;;  %p272_p7 = scmp.lt.s32.totalorder %s1989_s12, 4 }
   0xe   : > { %p2099_p8 = por %p2562_p5, %p110_p3  ;;  %s1991_s21 = smov [#allocation2]  }
   0xf   : > { %p2104_p10 = pnand %p1389_p6, %p272_p7  ;;  %s284_s22 = sshll.u32 %s1991_s21, 4  ;;  %s285_s22 = int_to_ptr.vmem [resolvable:$true] %s284_s22 }
  0x10   : > { %s2576_s19 = scalar_select %p2099_p8, 1, 0 }
  0x11   : > { %s2577_s20 = scalar_select %p2104_p10, 1, 0 }
  0x12   : > { %p1716_p11 = pneg %p2104_p10  ;;  %p1732_p13 = scmp.lt.s32.totalorder %s1989_s12, 3 }
  0x13   : > { %s2580_s0 = sld [smem:[#allocation16_spill]] }
  0x14   : > { %p2112_p12 = pnand %p1716_p11, %p2562_p5  ;;  %p2119_p0 = pnand %p1732_p13, %p2090_p4 }
  0x16   : > { %s2579_s24 = scalar_select %p2119_p0, 1, 0 }
  0x17   : > { %p2569_p2 = pneg %p2112_p12 }
  0x19   : > { %s1801_s27 = scalar_lea.hbm %s2580_s0, 256 }
  0x1a   : > { %p1802_p1 = scmp.ne.s32.totalorder %s2580_s0, %s1801_s27  ;;  %p1808_p4 = scmp.lt.u32.totalorder %s1801_s27, %s2580_s0 }
  0x1c   : > { %p1804_p3 = pnand %p2569_p2, %p1802_p1 }
  0x1e   : > { %p1805_p6 = pneg %p1804_p3 }
  0x20   : > { %p1810_p7 = pnand %p1808_p4, %p1805_p6 }
  0x22   : > { %1813 = shalt.err (!%p1810_p7)
}
  0x23   : > { %s1814_s16 = scalar_lea.vmem %s285_s22, 256  ;;  %p1822_p5 = scmp.lt.s32.totalorder %s285_s22, %s285_s22 }
  0x24   : > { %p1815_p11 = scmp.ne.s32.totalorder %s285_s22, %s1814_s16  ;;  %p1823_p8 = scmp.lt.s32.totalorder %s1814_s16, %s1814_s16 }
  0x26   : > { %p1817_p13 = pnand %p1815_p11, %p2569_p2  ;;  %p1824_p10 = por %p1823_p8, %p1822_p5 }
  0x28   : > { %p1818_p9 = pneg %p1817_p13 }
  0x2a   : > { %p1825_p0 = pnand %p1824_p10, %p1818_p9 }
  0x2c   : > { %1828 = shalt.err (!%p1825_p0)
}
  0x2d   : > { %s1992_s18 = smov 128   ;;  %s1993_s21 = smov 8  }
  0x2e   : > { %1719 = dma.hbm_to_vmem [thread:$0]  (!%p2112_p12), %s2580_s0, 256, %s285_s22, [#allocation3], %s1992_s18, %s1992_s18, %s1993_s21  }
  0x2f   : > { %s317_s27 = sand.u32 1, %s1989_s12   ;;  %s319_s28 = sand.u32 1, %s1985_s11  }
  0x30   : > { %s2147_s29 = sshll.u32 %s319_s28, 6  ;;  %s2568_s30 = sshll.u32 %s1989_s12, 10 }
  0x31   : > { %s2155_s17 = scalar_lea.hbm %s2555_s3, %s2568_s30  ;;  %s321_s14 = scalar_lea.vmem [#allocation7], %s2147_s29 }
  0x32   : > { %s328_s25 = sshll.u32 %s321_s14, 4  ;;  %s1994_s22 = smov [#allocation5]   ;;  %s2158_s25 = int_to_ptr.vmem [resolvable:$true] %s328_s25 }
  0x33   : > { %s2160_s18 = sshll.u32 %s1994_s22, 4  ;;  %s2162_s21 = scalar_lea.sflag [#allocation3], %s317_s27  ;;  %s298_s18 = int_to_ptr.vmem [resolvable:$true] %s2160_s18 }
  0x34   : > { %s1829_s26 = scalar_lea.hbm %s2155_s17, 1024  ;;  %p2581_p8 = scmp.ne.s32.totalorder %s2579_s24, 0 }
  0x35   : > { %p1830_p5 = scmp.ne.s32.totalorder %s2155_s17, %s1829_s26  ;;  %s1834_s16 = scalar_lea.hbm %s2555_s3, 3072 }
  0x36   : > { %p2570_p9 = pneg %p2581_p8  ;;  %p1835_p1 = scmp.lt.u32.totalorder %s2155_s17, %s2555_s3 }
  0x37   : > { %p1836_p3 = scmp.lt.u32.totalorder %s1834_s16, %s1829_s26  ;;  %p1838_p4 = scmp.lt.u32.totalorder %s1829_s26, %s2155_s17 }
  0x38   : > { %p1832_p10 = pnand %p2570_p9, %p1830_p5 }
  0x39   : > { %p1837_p6 = por %p1836_p3, %p1835_p1 }
  0x3a   : > { %p1833_p0 = pneg %p1832_p10 }
  0x3b   : > { %p1839_p7 = por %p1838_p4, %p1837_p6 }
  0x3d   : > { %p1840_p11 = pnand %p1839_p7, %p1833_p0 }
  0x3f   : > { %1843 = shalt.err (!%p1840_p11)
}
  0x40   : > { %s1844_s27 = scalar_lea.vmem %s2158_s25, 1024  ;;  %s1995_s22 = smov [#allocation7]  }
  0x41   : > { %p1845_p13 = scmp.ne.s32.totalorder %s2158_s25, %s1844_s27  ;;  %s1849_s28 = sshll.u32 %s1995_s22, 4  ;;  %s1850_s28 = int_to_ptr.vmem [resolvable:$false] %s1849_s28 }
  0x42   : > { %s1851_s30 = scalar_lea.vmem %s1850_s28, 2048  ;;  %p1852_p2 = scmp.lt.s32.totalorder %s2158_s25, %s1850_s28 }
  0x43   : > { %p1847_p5 = pnand %p1845_p13, %p2570_p9  ;;  %p1853_p1 = scmp.lt.s32.totalorder %s1851_s30, %s1844_s27 }
  0x45   : > { %p1848_p10 = pneg %p1847_p5  ;;  %p1854_p3 = por %p1853_p1, %p1852_p2 }
  0x47   : > { %p1855_p6 = pnand %p1854_p3, %p1848_p10 }
  0x49   : > { %1858 = shalt.err (!%p1855_p6)
}
  0x4a   : > { %s1996_s26 = smov 64   ;;  %s1997_s15 = smov 4  }
  0x4b   : > { %1726 = dma.hbm_to_vmem [thread:$0]  (!%p2581_p8), %s2155_s17, 1024, %s2158_s25, %s2162_s21, %s1996_s26, %s1996_s26, %s1997_s15  }
  0x4c   : > { %s1859_s27 = scalar_lea.hbm %s2553_s1, 128  ;;  %p2582_p0 = pneg %p2112_p12 }
  0x4d   : > { %p1860_p2 = scmp.ne.s32.totalorder %s2553_s1, %s1859_s27  ;;  %p1866_p11 = scmp.lt.u32.totalorder %s1859_s27, %s2553_s1 }
  0x4f   : > { %p1862_p4 = pnand %p1860_p2, %p2582_p0 }
  0x51   : > { %p1863_p7 = pneg %p1862_p4 }
  0x53   : > { %p1868_p13 = pnand %p1866_p11, %p1863_p7 }
  0x55   : > { %1871 = shalt.err (!%p1868_p13)
}
  0x56   : > { %s1872_s17 = scalar_lea.vmem %s298_s18, 128  ;;  %p2583_p10 = pmov %p2582_p0 }
  0x57   : > { %p1873_p5 = scmp.ne.s32.totalorder %s298_s18, %s1872_s17  ;;  %p1880_p6 = scmp.lt.s32.totalorder %s298_s18, %s298_s18 }
  0x58   : > { %p1881_p9 = scmp.lt.s32.totalorder %s1872_s17, %s1872_s17 }
  0x59   : > { %p1875_p1 = pnand %p1873_p5, %p2583_p10 }
  0x5a   : > { %p1882_p8 = por %p1881_p9, %p1880_p6 }
  0x5b   : > { %p1876_p3 = pneg %p1875_p1 }
  0x5d   : > { %p1883_p0 = pnand %p1882_p8, %p1876_p3 }
  0x5f   : > { %1886 = shalt.err (!%p1883_p0)
}
  0x60   : > { %1722 = dma.hbm_to_vmem [thread:$0]  (!%p2112_p12), %s2553_s1, 128, %s298_s18, [#allocation6], %s1996_s26, %s1996_s26, %s1997_s15  }
  0x61   : > { %s2584_s16 = sshll.u32 %s1989_s12, 10  ;;  %s348_s23 = scalar_lea.vmem [#allocation8], %s2147_s29 }
  0x62   : > { %s2222_s22 = scalar_lea.hbm %s2557_s5, %s2584_s16  ;;  %s355_s28 = sshll.u32 %s348_s23, 4  ;;  %s2225_s28 = int_to_ptr.vmem [resolvable:$true] %s355_s28 }
  0x63   : > { %s1887_s30 = scalar_lea.hbm %s2222_s22, 1024  ;;  %p2585_p9 = scmp.ne.s32.totalorder %s2579_s24, 0 }
  0x64   : > { %p1888_p8 = scmp.ne.s32.totalorder %s2222_s22, %s1887_s30  ;;  %s1892_s17 = scalar_lea.hbm %s2557_s5, 3072 }
  0x65   : > { %p2586_p2 = pneg %p2585_p9  ;;  %p1893_p7 = scmp.lt.u32.totalorder %s2222_s22, %s2557_s5 }
  0x66   : > { %p1894_p11 = scmp.lt.u32.totalorder %s1892_s17, %s1887_s30  ;;  %p1896_p5 = scmp.lt.u32.totalorder %s1887_s30, %s2222_s22 }
  0x67   : > { %p1890_p4 = pnand %p1888_p8, %p2586_p2 }
  0x68   : > { %p1895_p13 = por %p1894_p11, %p1893_p7 }
  0x69   : > { %p1891_p12 = pneg %p1890_p4 }
  0x6a   : > { %p1897_p10 = por %p1896_p5, %p1895_p13 }
  0x6c   : > { %p1898_p1 = pnand %p1897_p10, %p1891_p12 }
  0x6e   : > { %1901 = shalt.err (!%p1898_p1)
}
  0x6f   : > { %s1902_s29 = scalar_lea.vmem %s2225_s28, 1024  ;;  %p2587_p6 = pmov %p2586_p2 }
  0x70   : > { %p1903_p3 = scmp.ne.s32.totalorder %s2225_s28, %s1902_s29  ;;  %s1998_s16 = smov [#allocation8]  }
  0x71   : > { %s1907_s14 = sshll.u32 %s1998_s16, 4  ;;  %s1908_s14 = int_to_ptr.vmem [resolvable:$false] %s1907_s14 }
  0x72   : > { %p1905_p0 = pnand %p1903_p3, %p2587_p6  ;;  %s1909_s27 = scalar_lea.vmem %s1908_s14, 2048 }
  0x73   : > { %p1910_p2 = scmp.lt.s32.totalorder %s2225_s28, %s1908_s14  ;;  %p1911_p4 = scmp.lt.s32.totalorder %s1909_s27, %s1902_s29 }
  0x74   : > { %p1906_p8 = pneg %p1905_p0 }
  0x75   : > { %p1912_p7 = por %p1911_p4, %p1910_p2 }
  0x77   : > { %p1913_p11 = pnand %p1912_p7, %p1906_p8 }
  0x79   : > { %1916 = shalt.err (!%p1913_p11)
}
  0x7a   : > { %1729 = dma.hbm_to_vmem [thread:$0]  (!%p2585_p9), %s2222_s22, 1024, %s2225_s28, %s2162_s21, %s1996_s26, %s1996_s26, %s1997_s15  }
  0x7b   : > { %p2588_p12 = scmp.ne.s32.totalorder %s2577_s20, 0 }
  0x7c   : > { %p2589_p13 = scmp.eq.s32.totalorder (!%p2588_p12), %s2075_s13, 0 }
  0x7d   : > { %385 = sbr.rel (%p2588_p12) target bundleno = 1108 (0x454), region = 56 }
  0x84   : > { %1960 = dma.done.wait (%p2589_p13), [#allocation3], 256   ;;  %p2590_p5 = pmov %p2589_p13 }
  0x86   : > { %1962 = vsyncadd (%p2590_p5), [#allocation3], 4294967040  ;;  %p2591_p10 = pmov %p2590_p5 }
  0x87   : > { %p2592_p1 = pmov %p2590_p5 }
  0x88   : > { %1964 = dma.done.wait (%p2591_p10), [#allocation6], 128  }
  0x89   : > { %1966 = vsyncadd (%p2592_p1), [#allocation6], 4294967168  ;;  %s395_s24 = sand.u32 1, %s2075_s13   ;;  %s397_s21 = sand.u32 1, %s1981_s10  }
  0x8a   : > { %s1402_s26 = sshll.u32 %s397_s21, 6  ;;  %s396_s20 = scalar_lea.sflag [#allocation3], %s395_s24 }
  0x8b   : > { %s2266_s15 = scalar_lea.vmem [#allocation7], %s1402_s26  ;;  %p2593_p9 = scmp.ne.s32.totalorder %s2576_s19, 0 }
  0x8d   : > { %1968 = dma.done.wait (%p2593_p9), %s396_s20, 2048  }
  0x8e   : > { %1970 = vsyncadd (%p2593_p9), %s396_s20, 4294965248  ;;  %p458_p3 = scmp.lt.s32.totalorder %s2075_s13, 2  ;;  %s2296_s20 = scalar_lea.vmem [#allocation8], %s1402_s26 }
  0x8f   : > { %p2594_p6 = scmp.ne.s32.totalorder %s2075_s13, 0 }
  0x90   : > { %s2274_s22 = scalar_select %p458_p3, %s2075_s13, 2 }
  0x91   : > { %477 = sbr.rel (%p2594_p6) target bundleno = 152 (0x98), region = 76  ;;  %v478_v0 = vld [vmem:[#allocation2] sm:$0xff] (!%p2594_p6)  ;;  %v479_v1 = vld [vmem:[#allocation2 + $0x8] sm:$0xff] (!%p2594_p6) }
  0x92   : > { %s460_s30 = scalar_lea.vmem %s2554_s2, %s2274_s22  ;;  %s463_s17 = scalar_lea.vmem %s2556_s4, %s2274_s22  ;;  %480 = vst [vmem:[#allocation9] sm:$0xff] (!%p2594_p6), %v478_v0  ;;  %481 = vst [vmem:[#allocation9 + $0x8] sm:$0xff] (!%p2594_p6), %v479_v1 }
  0x93   : > { %s466_s25 = scalar_lea.vmem %s2558_s6, %s2274_s22  ;;  %s469_s14 = scalar_lea.vmem %s2559_s7, %s2274_s22 }
  0x94   : > { %s472_s21 = scalar_lea.vmem %s2560_s8, %s2274_s22 }
  0x98 PF: > { %v1999_v4 = vmov 0.0   ;;  %vm2000_vm0 = vmmov 0   ;;  %v1782_v6 = vld [vmem:[#allocation5] sm:$0xff]   ;;  %v1783_v7 = vld [vmem:[%s2266_s15] sm:$0xff]   ;;  %vm501_vm1 = vcmask 130048   ;;  %v1784_v8 = vld [vmem:[%s2266_s15 + $0x8] sm:$0xff]   ;;  %v790_v33 = vlaneseq }
  0x99   : > { %v2300_v2 = vld [vmem:[#allocation9] sm:$0xff]  ;;  %v2302_v3 = vld [vmem:[#allocation9 + $0x8] sm:$0xff]  ;;  %1536 = vmatprep.subr.bf16.mxu0 %v1999_v4  ;;  %1538 = vmatprep.mubr.msk.bf16.mxu0 %vm2000_vm0, %v1999_v4  ;;  %v1785_v9 = vld [vmem:[%s2266_s15 + $0x10] sm:$0xff]   ;;  %v2001_v34 = vmov 0.0|0.0   ;;  %v2002_v53 = vmov 1.0|1.0  }
  0x9a   : > { %v486_v5 = vpack.c.bf16 %v2302_v3, %v2300_v2  ;;  %1542 = vmatprep.subr.bf16.mxu1 %v1999_v4  ;;  %1558 = vmatprep.mubr.msk.bf16.mxu1 %vm2000_vm0, %v1999_v4  ;;  %v1786_v10 = vld [vmem:[%s2266_s15 + $0x18] sm:$0xff]   ;;  %v1787_v11 = vld [vmem:[%s2266_s15 + $0x20] sm:$0xff]   ;;  %v1788_v12 = vld [vmem:[%s2266_s15 + $0x28] sm:$0xff]   ;;  %v2356_v35 = vshrl.u32 %v790_v33, 7  ;;  %v1000_v36 = vand.u32 127, %v790_v33  ;;  %p2607_p0 = scmp.ne.s32.totalorder %s2075_s13, 0 }
  0x9b   : > { %1543 = vmatpush3.bf16.msra.mxu1 %v1783_v7  ;;  %v1789_v13 = vld [vmem:[%s2266_s15 + $0x30] sm:$0xff]   ;;  %v1790_v14 = vld [vmem:[%s2266_s15 + $0x38] sm:$0xff]   ;;  %v1791_v15 = vld [vmem:[%s2296_s20] sm:$0xff]  }
  0x9c   : > { %1537 = vmatpush3.bf16.msra.mxu0 %v486_v5  ;;  %1544 = vmatprep.subr.bf16.mxu1 %v1999_v4  ;;  %v1792_v16 = vld [vmem:[%s2296_s20 + $0x8] sm:$0xff]   ;;  %v1793_v17 = vld [vmem:[%s2296_s20 + $0x10] sm:$0xff]   ;;  %v1794_v18 = vld [vmem:[%s2296_s20 + $0x18] sm:$0xff]   ;;  %v792_v37 = vadd.s32 8, %v2356_v35  ;;  %v811_v38 = vand.u32 31, %v2356_v35  ;;  %v2360_v39 = vand.u32 31, %v1000_v36 }
  0x9d   : > { %1562 = vmatprep.subr.bf16.mxu0 %v1999_v4  ;;  %v1795_v19 = vld [vmem:[%s2296_s20 + $0x20] sm:$0xff]   ;;  %v1796_v20 = vld [vmem:[%s2296_s20 + $0x28] sm:$0xff]   ;;  %v1797_v31 = vld [vmem:[%s2296_s20 + $0x30] sm:$0xff]   ;;  %v793_v40 = vadd.s32 16, %v2356_v35  ;;  %v794_v41 = vadd.s32 24, %v2356_v35  ;;  %v795_v42 = vadd.s32 32, %v2356_v35 }
  0x9e   : > { %v1405_v21 = vld [vmem:[%s460_s30] ss:$0 sm:$0xff]  ;;  %v1798_v32 = vld [vmem:[%s2296_s20 + $0x38] sm:$0xff]   ;;  %v796_v43 = vadd.s32 40, %v2356_v35  ;;  %v818_v44 = vand.u32 31, %v792_v37  ;;  %vm2367_vm2 = vcmp.eq.s32.totalorder %v811_v38, %v2360_v39  ;;  %v798_v5 = vadd.s32 56, %v2356_v35 }
  0x9f   : > { %1539 = vmatmul.mubr.msk.bf16.vlgmr.msra.gmra.mrb[0].mxu0 %vm501_vm1, %v1782_v6  ;;  %1545 = vmatpush3.bf16.msra.mxu1 %v1784_v8  ;;  %v494_v22 = vmul.f32 %v1405_v21, %v2300_v2  ;;  %v495_v23 = vmul.f32 %v1405_v21, %v2302_v3  ;;  %v825_v46 = vand.u32 31, %v793_v40  ;;  %v832_v47 = vand.u32 31, %v794_v41  ;;  %v1408_v56 = vld [vmem:[%s463_s17] ss:$0 sm:$0xff] }
  0xa0   : > { %1578 = vmatprep.mubr.msk.bf16.mxu0 %vm2000_vm0, %v1999_v4  ;;  %1546 = vmatprep.subr.bf16.mxu1 %v1999_v4  ;;  %vm2372_vm3 = vcmp.eq.s32.totalorder %v818_v44, %v2360_v39  ;;  %v839_v50 = vand.u32 31, %v795_v42  ;;  %v846_v51 = vand.u32 31, %v796_v43  ;;  %v860_v7 = vand.u32 31, %v798_v5 }
  0xa1   : > { %1563 = vmatpush3.bf16.msra.mxu0 %v1791_v15  ;;  %vm2377_vm4 = vcmp.eq.s32.totalorder %v825_v46, %v2360_v39  ;;  %vm1653_vm5 = vmpackc.low %vm2372_vm3, %vm2367_vm2  ;;  %vm2386_vm6 = vcmp.eq.s32.totalorder %v832_v47, %v2360_v39  ;;  %v799_v8 = vadd.s32 64, %v2356_v35  ;;  %v806_v21 = vadd.s32 120, %v2356_v35 }
  0xa2   : > { %1564 = vmatprep.subr.bf16.mxu0 %v1999_v4  ;;  %vm1656_vm7 = vmpackc.low %vm2386_vm6, %vm2377_vm4  ;;  %vm2402_vm8 = vcmp.eq.s32.totalorder %v839_v50, %v2360_v39  ;;  %vm2407_vm9 = vcmp.eq.s32.totalorder %v846_v51, %v2360_v39  ;;  %vm1020_vm12 = vcmp.eq.s32.totalorder %v860_v7, %v2360_v39 }
  0xa3   : > { %1547 = vmatpush3.bf16.msra.mxu1 %v1785_v9  ;;  %vm1659_vm10 = vmpackc.low %vm2407_vm9, %vm2402_vm8  ;;  %v800_v9 = vadd.s32 72, %v2356_v35 }
  0xa4   : > { %1548 = vmatprep.subr.bf16.mxu1 %v1999_v4 }
  0xa5   : > { %1565 = vmatpush3.bf16.msra.mxu0 %v1792_v16  ;;  %v803_v16 = vadd.s32 96, %v2356_v35 }
  0xa6   : > { %1566 = vmatprep.subr.bf16.mxu0 %v1999_v4 }
  0xa7   : > { %1549 = vmatpush3.bf16.msra.mxu1 %v1786_v10  ;;  %v867_v10 = vand.u32 31, %v799_v8 }
  0xa8   : > { %1550 = vmatprep.subr.bf16.mxu1 %v1999_v4 }
  0xa9   : > { %1567 = vmatpush3.bf16.msra.mxu0 %v1793_v17  ;;  %vm1021_vm14 = vcmp.eq.s32.totalorder %v867_v10, %v2360_v39  ;;  %v804_v17 = vadd.s32 104, %v2356_v35 }
  0xaa   : > { %1568 = vmatprep.subr.bf16.mxu0 %v1999_v4 }
  0xab   : > { %1551 = vmatpush3.bf16.msra.mxu1 %v1787_v11  ;;  %v874_v11 = vand.u32 31, %v800_v9 }
  0xac   : > { %1552 = vmatprep.subr.bf16.mxu1 %v1999_v4 }
  0xad   : > { %1569 = vmatpush3.bf16.msra.mxu0 %v1794_v18  ;;  %vm1022_vm15 = vcmp.eq.s32.totalorder %v874_v11, %v2360_v39  ;;  %v895_v18 = vand.u32 31, %v803_v16 }
  0xae   : > { %1570 = vmatprep.subr.bf16.mxu0 %v1999_v4 }
  0xaf   : > { %1553 = vmatpush3.bf16.msra.mxu1 %v1788_v12  ;;  %v801_v12 = vadd.s32 80, %v2356_v35  ;;  %vm1025_vm4 = vcmp.eq.s32.totalorder %v895_v18, %v2360_v39 }
  0xb0   : > { %1554 = vmatprep.subr.bf16.mxu1 %v1999_v4 }
  0xb1   : > { %1571 = vmatpush3.bf16.msra.mxu0 %v1795_v19  ;;  %v902_v19 = vand.u32 31, %v804_v17 }
  0xb2   : > { %1572 = vmatprep.subr.bf16.mxu0 %v1999_v4 }
  0xb3   : > { %1555 = vmatpush3.bf16.msra.mxu1 %v1789_v13  ;;  %v802_v13 = vadd.s32 88, %v2356_v35 }
  0xb4   : > { %1556 = vmatprep.subr.bf16.mxu1 %v1999_v4 }
  0xb5   : > { %1573 = vmatpush3.bf16.msra.mxu0 %v1796_v20  ;;  %v888_v15 = vand.u32 31, %v802_v13  ;;  %v805_v20 = vadd.s32 112, %v2356_v35 }
  0xb6   : > { %1574 = vmatprep.subr.bf16.mxu0 %v1999_v4 }
  0xb7   : > { %1557 = vmatpush3.bf16.msra.mxu1 %v1790_v14  ;;  %v881_v14 = vand.u32 31, %v801_v12  ;;  %vm1024_vm2 = vcmp.eq.s32.totalorder %v888_v15, %v2360_v39 }
  0xb8   : > { %1652 = vmatprep.subr.bf16.mxu1 %v2001_v34 }
  0xb9   : > { %1575 = vmatpush3.bf16.msra.mxu0 %v1797_v31  ;;  %vm1023_vm1 = vcmp.eq.s32.totalorder %v881_v14, %v2360_v39 }
  0xba   : > { %1576 = vmatprep.subr.bf16.mxu0 %v1999_v4  ;;  %vm1668_vm3 = vmpackc.low %vm1024_vm2, %vm1023_vm1 }
  0xbd   : > { %1577 = vmatpush3.bf16.msra.mxu0 %v1798_v32 }
  0xbe   : > { %1676 = vmatprep.subr.bf16.mxu0 %v2001_v34 }
 0x172   : > { %v539_v24 = vpop.f32.mrb[0].mxu0 }
 0x173   : > { %v540_v25 = vadd.f32 %v539_v24, %v494_v22  ;;  %v1540_v26 = vpop.f32.mrb[1].mxu0  ;;  %v909_v22 = vand.u32 31, %v805_v20  ;;  %v1417_v24 = vld [vmem:[%s466_s25] ss:$0 sm:$0xff] }
 0x174   : > { %v542_v27 = vpop.f32.mrb[2].mxu0 }
 0x175   : > { %v543_v28 = vadd.f32 %v542_v27, %v495_v23  ;;  %v1541_v29 = vpop.f32.mrb[3].mxu0  ;;  %v916_v23 = vand.u32 31, %v806_v21 }
 0x177   : > { %v546_v30 = vpack.c.bf16 %v543_v28, %v540_v25  ;;  %vm1028_vm8 = vcmp.eq.s32.totalorder %v916_v23, %v2360_v39 }
 0x179   : > { %1559 = vmatmul.mubr.bf16.vlgmr.msra.gmra.mrb[0].mxu1 %v546_v30 }
 0x17a   : > { %1614 = vmatprep.mubr.msk.f32.mxu1 %vm2000_vm0, %v1999_v4  ;;  %1654 = vmatpush3.bf16.msk.msra.mxu1 %vm1653_vm5, %v2002_v53 }
 0x17b   : > { %1655 = vmatprep.subr.bf16.mxu1 %v2001_v34 }
 0x17e   : > { %1657 = vmatpush3.bf16.msk.msra.mxu1 %vm1656_vm7, %v2002_v53 }
 0x17f   : > { %1658 = vmatprep.subr.bf16.mxu1 %v2001_v34 }
 0x182   : > { %1660 = vmatpush3.bf16.msk.msra.mxu1 %vm1659_vm10, %v2002_v53 }
 0x183   : > { %1661 = vmatprep.subr.bf16.mxu1 %v2001_v34 }
 0x24c   : > { %v652_v57 = vpop.f32.mrb[0].mxu1 }
 0x24d   : > { %v653_v58 = vadd.f32 %v1408_v56, %v652_v57  ;;  %v1560_v59 = vpop.f32.mrb[1].mxu1 }
 0x24e   : > { %v655_v60 = vpop.f32.mrb[2].mxu1  ;;  %v1217_v59 = vsub.s32 0, %v2356_v35 }
 0x24f   : > { %v656_v61 = vadd.f32 %v1408_v56, %v655_v60  ;;  %v1561_v62 = vpop.f32.mrb[3].mxu1  ;;  %v659_v63 = vmax.f32 %v653_v58, 0.0  ;;  %v1207_v58 = vld [vmem:[%s469_s14] sm:$0x1] }
 0x250   : > { %v1211_v62 = vld [vmem:[%s472_s21] sm:$0x1] }
 0x251   : > { %v660_v0 = vmax.f32 %v656_v61, 0.0 }
 0x253   : > { %v661_v1 = vpack.c.bf16 %v660_v0, %v659_v63 }
 0x255   : > { %1579 = vmatmul.mubr.bf16.vlgmr.msra.gmra.mrb[4].mxu0 %v661_v1 }
 0x256   : > { %1678 = vmatpush3.bf16.msk.msra.mxu0 %vm1653_vm5, %v2002_v53  ;;  %1649 = vmatprep.mubr.msk.f32.mxu0 %vm2000_vm0, %v1999_v4  ;;  %v797_v4 = vadd.s32 48, %v2356_v35  ;;  %vm1665_vm0 = vmpackc.low %vm1022_vm15, %vm1021_vm14  ;;  %vm1026_vm5 = vcmp.eq.s32.totalorder %v902_v19, %v2360_v39 }
 0x257   : > { %1679 = vmatprep.subr.bf16.mxu0 %v2001_v34  ;;  %vm1671_vm6 = vmpackc.low %vm1026_vm5, %vm1025_vm4 }
 0x258   : > { %v853_v6 = vand.u32 31, %v797_v4 }
 0x25a   : > { %1681 = vmatpush3.bf16.msk.msra.mxu0 %vm1656_vm7, %v2002_v53  ;;  %vm1019_vm11 = vcmp.eq.s32.totalorder %v853_v6, %v2360_v39  ;;  %vm1027_vm7 = vcmp.eq.s32.totalorder %v909_v22, %v2360_v39 }
 0x25b   : > { %1682 = vmatprep.subr.bf16.mxu0 %v2001_v34  ;;  %vm1662_vm13 = vmpackc.low %vm1020_vm12, %vm1019_vm11 }
 0x25c   : > { %1663 = vmatpush3.bf16.msk.msra.mxu1 %vm1662_vm13, %v2002_v53  ;;  %vm1674_vm9 = vmpackc.low %vm1028_vm8, %vm1027_vm7 }
 0x25d   : > { %1664 = vmatprep.subr.bf16.mxu1 %v2001_v34 }
 0x25e   : > { %1684 = vmatpush3.bf16.msk.msra.mxu0 %vm1659_vm10, %v2002_v53 }
 0x25f   : > { %1685 = vmatprep.subr.bf16.mxu0 %v2001_v34 }
 0x260   : > { %1666 = vmatpush3.bf16.msk.msra.mxu1 %vm1665_vm0, %v2002_v53 }
 0x261   : > { %1667 = vmatprep.subr.bf16.mxu1 %v2001_v34 }
 0x262   : > { %1687 = vmatpush3.bf16.msk.msra.mxu0 %vm1662_vm13, %v2002_v53 }
 0x263   : > { %1688 = vmatprep.subr.bf16.mxu0 %v2001_v34 }
 0x264   : > { %1669 = vmatpush3.bf16.msk.msra.mxu1 %vm1668_vm3, %v2002_v53 }
 0x265   : > { %1670 = vmatprep.subr.bf16.mxu1 %v2001_v34 }
 0x266   : > { %1690 = vmatpush3.bf16.msk.msra.mxu0 %vm1665_vm0, %v2002_v53 }
 0x267   : > { %1691 = vmatprep.subr.bf16.mxu0 %v2001_v34 }
 0x268   : > { %1672 = vmatpush3.bf16.msk.msra.mxu1 %vm1671_vm6, %v2002_v53 }
 0x269   : > { %1673 = vmatprep.subr.bf16.mxu1 %v2001_v34 }
 0x26a   : > { %1693 = vmatpush3.bf16.msk.msra.mxu0 %vm1668_vm3, %v2002_v53 }
 0x26b   : > { %1694 = vmatprep.subr.bf16.mxu0 %v2001_v34 }
 0x26c   : > { %1675 = vmatpush3.bf16.msk.msra.mxu1 %vm1674_vm9, %v2002_v53 }
 0x26e   : > { %1696 = vmatpush3.bf16.msk.msra.mxu0 %vm1671_vm6, %v2002_v53 }
 0x26f   : > { %1697 = vmatprep.subr.bf16.mxu0 %v2001_v34 }
 0x272   : > { %1699 = vmatpush3.bf16.msk.msra.mxu0 %vm1674_vm9, %v2002_v53 }
 0x328   : > { %v767_v25 = vpop.f32.mrb[4].mxu0 }
 0x329   : > { %v768_v26 = vadd.f32 %v1417_v24, %v767_v25  ;;  %v1580_v27 = vpop.f32.mrb[5].mxu0 }
 0x32a   : > { %v770_v28 = vpop.f32.mrb[6].mxu0 }
 0x32b   : > { %v771_v29 = vadd.f32 %v1417_v24, %v770_v28  ;;  %v1581_v30 = vpop.f32.mrb[7].mxu0  ;;  %v781_v31 = vmul.f32 %v768_v26, %v768_v26 }
 0x32d   : > { %v774_v32 = vadd.f32 %v771_v29, %v768_v26  ;;  %v782_v33 = vmul.f32 %v771_v29, %v771_v29 }
 0x32f   : > { %v775_v34 = vrot.slane %v774_v32, 4  ;;  %v783_v36 = vadd.f32 %v782_v33, %v781_v31 }
 0x331   : > { %v776_v37 = vadd.f32 %v775_v34, %v774_v32  ;;  %v784_v38 = vrot.slane %v783_v36, 4 }
 0x333   : > { %v777_v39 = vrot.slane %v776_v37, 2  ;;  %v785_v40 = vadd.f32 %v784_v38, %v783_v36 }
 0x335   : > { %v778_v41 = vadd.f32 %v777_v39, %v776_v37  ;;  %v786_v42 = vrot.slane %v785_v40, 2 }
 0x337   : > { %v779_v43 = vrot.slane %v778_v41, 1  ;;  %v787_v44 = vadd.f32 %v786_v42, %v785_v40 }
 0x339   : > { %v780_v45 = vadd.f32 %v779_v43, %v778_v41  ;;  %v788_v46 = vrot.slane %v787_v44, 1 }
 0x33b   : > { %1615 = vmatmul.mubr.f32.vlgmr.msra.gmra.mrb[4].mxu1 %v780_v45  ;;  %v789_v47 = vadd.f32 %v788_v46, %v787_v44 }
 0x33d   : > { %1650 = vmatmul.mubr.f32.vlgmr.msra.gmra.mrb[8].mxu0 %v789_v47 }
 0x40e   : > { %v1127_v48 = vpop.f32.mrb[4].mxu1 }
 0x40f   : > { %v1132_v49 = vmul.f32 0.015625, %v1127_v48  ;;  %v1616_v50 = vpop.f32.mrb[5].mxu1 }
 0x410   : > { %v1199_v51 = vpop.f32.mrb[8].mxu0 }
 0x411   : > { %v1204_v52 = vmul.f32 %v1132_v49, %v1132_v49  ;;  %v1203_v53 = vmul.f32 0.015625, %v1199_v51  ;;  %v1651_v54 = vpop.f32.mrb[9].mxu0 }
 0x413   : > { %v1205_v55 = vsub.f32 %v1203_v53, %v1204_v52 }
 0x415   : > { %v1206_v56 = vmax.f32 %v1205_v55, 0.0 }
 0x417   : > { %v1208_v57 = vadd.f32 1e-05, %v1206_v56 }
 0x419   : > { %1799 = vrsqrt.f32 %v1208_v57 }
 0x423   : > { %v1800_v60 = vpop.eup %1799 }
 0x424   : > { %v1210_v61 = vmul.f32 %v1800_v60, %v1207_v58 }
 0x426   : > { %v1212_v63 = vmul.f32 %v1210_v61, %v1132_v49  ;;  %v1218_v0 = vrot.slane %v1210_v61, %v1217_v59 }
 0x428   : > { %v1213_v1 = vsub.f32 %v1211_v62, %v1212_v63  ;;  %v1220_v4 = vmul.f32 %v1218_v0, %v768_v26  ;;  %v1221_v5 = vmul.f32 %v1218_v0, %v771_v29  ;;  %1234 = sbr.rel (%p2607_p0) target bundleno = 1073 (0x431), region = 80 }
 0x42a   : > { %v1226_v6 = vrot.slane %v1213_v1, %v1217_v59 }
 0x42c   : > { %v1228_v7 = vadd.f32 %v1226_v6, %v1220_v4  ;;  %v1229_v8 = vadd.f32 %v1226_v6, %v1221_v5 }
 0x42e   : > { %v1230_v9 = vmax.f32 %v1228_v7, 0.0  ;;  %v1231_v10 = vmax.f32 %v1229_v8, 0.0 }
 0x430   : > { %1235 = vst [vmem:[#allocation9] sm:$0xff] %v1230_v9  ;;  %1236 = vst [vmem:[#allocation9 + $0x8] sm:$0xff] %v1231_v10 }
 0x431 PF: > { %p1475_p8 = scmp.le.s32.totalorder %s2075_s13, 0 }
 0x432   : > { %v1241_v35 = vadd.f32 (!%p1475_p8), %v1230_v9, %v2300_v2  ;;  %v1242_v11 = vadd.f32 (!%p1475_p8), %v1231_v10, %v2302_v3 }
 0x433   : > { %1240 = sbr.rel (%p1475_p8) target bundleno = 1082 (0x43a), region = 84 }
 0x434   : > { %1243 = vst [vmem:[#allocation9] sm:$0xff] (!%p1475_p8), %v1241_v35  ;;  %1244 = vst [vmem:[#allocation9 + $0x8] sm:$0xff] (!%p1475_p8), %v1242_v11 }
 0x43a PF: > { %p1735_p2 = scmp.eq.s32.totalorder %s2075_s13, 2  ;;  %s2003_s22 = smov [#allocation9]  }
 0x43b   : > { %s1251_s25 = sshll.u32 %s2003_s22, 4  ;;  %s1252_s25 = int_to_ptr.vmem [resolvable:$true] %s1251_s25 }
 0x43c   : > { %s1917_s29 = scalar_lea.vmem %s1252_s25, 256  ;;  %p1924_p12 = scmp.lt.s32.totalorder %s1252_s25, %s1252_s25 }
 0x43d   : > { %p1918_p4 = scmp.ne.s32.totalorder %s1252_s25, %s1917_s29  ;;  %p1925_p13 = scmp.lt.s32.totalorder %s1917_s29, %s1917_s29 }
 0x43f   : > { %p1919_p7 = pnand %p1918_p4, %p1735_p2  ;;  %p1926_p5 = por %p1925_p13, %p1924_p12 }
 0x441   : > { %p1920_p11 = pneg %p1919_p7 }
 0x443   : > { %p1927_p10 = pnand %p1926_p5, %p1920_p11 }
 0x445   : > { %1930 = shalt.err (!%p1927_p10)
}
 0x446   : > { %s1931_s27 = scalar_lea.hbm %s2561_s9, 256 }
 0x447   : > { %p1932_p1 = scmp.ne.s32.totalorder %s2561_s9, %s1931_s27  ;;  %p1937_p6 = scmp.lt.u32.totalorder %s1931_s27, %s2561_s9 }
 0x449   : > { %p1933_p9 = pnand %p1932_p1, %p1735_p2 }
 0x44b   : > { %p1934_p3 = pneg %p1933_p9 }
 0x44d   : > { %p1939_p0 = pnand %p1937_p6, %p1934_p3 }
 0x44f   : > { %1942 = shalt.err (!%p1939_p0)
}
 0x450   : > { %s2004_s15 = smov 128   ;;  %s2005_s23 = smov 8  }
 0x451   : > { %1713 = dma.vmem_to_hbm [thread:$0]  (%p1735_p2), %s1252_s25, 256, %s2561_s9, [#allocation4], %s2004_s15, %s2004_s15, %s2005_s23  }
 0x452   : > { %1972 = dma.done.wait (%p1735_p2), [#allocation4], 256  }
 0x453   : > { %1974 = vsyncadd (%p1735_p2), [#allocation4], 4294967040 }
 0x454 PF: > { %s2608_s12 = sld [smem:[#allocation14_spill]]  ;;  %s2609_s18 = sld [smem:[#allocation15_spill]] }
 0x455   : > { %s2610_s30 = smov %s1981_s10  ;;  %s2611_s10 = smov %s1985_s11 }
 0x45a   : > { %p19_p8 = scmp.ge.s32.totalorder %s2608_s12, 5   ;;  %s2612_s11 = smov %s2609_s18 }
 0x45c   :  { %21 = sbr.rel (!%p19_p8) target bundleno = 6 (0x6), region = 138 }
 0x463   :  { %1267 = vsyncpa [#allocation3], 1 }
 0x464   :  { %1269 = vsyncpa [#allocation3 + $0x1], 1 }
 0x465   :  { %1270 = vsyncpa [#allocation6], 1 }
 0x466   :  { %1271 = vsyncpa [#allocation4], 1 }
 0x467   :  { %1273 = vsyncpa [#allocation4 + $0x1], 1 }

</bundles_post_ra>
